<compile_context>
chip_gen: v6e
topology: v6e:2x2x1
jax: 0.10.0
libtpu: 0.0.40
codegen_flags: <defaults>
</compile_context>

<pallas_src>
import functools

import jax
import jax.numpy as jnp
from jax import lax
from jax.experimental import pallas as pl
from jax.experimental.pallas import tpu as pltpu

HIDDEN = 32        # config.hidden_size
NUM_LABELS = 4     # config.num_labels
SEQ = 8            # sequence length
BATCH = 2
TAPS = 5           # widest conv kernel size
PAD = (TAPS - 1) // 2
LANE = 128         # lane-dense output width


def conv_head_kernel(xt_ref, wst_ref, ball_ref, wfc_ref, bfc_ref, out_ref, *,
                     batch, seqlen):
    # One fused conv matmul: (B*L, TAPS*H) @ (TAPS*H, 3H) -> (B*L, 3H).
    c_all = jnp.dot(xt_ref[...], wst_ref[...],
                    preferred_element_type=jnp.float32)

    # Global max-pool per batch row-group (tile-aligned sublane slices:
    # seqlen == 8), then add the conv biases once and apply ReLU.
    # max-then-ReLU == ReLU-then-max, and bias commutes with max over L.
    pooled = jnp.concatenate(
        [jnp.max(c_all[b * seqlen:(b + 1) * seqlen, :], axis=0, keepdims=True)
         for b in range(batch)],
        axis=0)                                             # (B, 3H)
    feat = jnp.maximum(pooled + ball_ref[...], 0.0)         # (B, 3H)
    # TODO(synk): Dropout(p=0.7) is identity in eval mode; training-mode
    # stochastic masking (pltpu.prng_*) is not implemented here.

    # Lane-dense FC: weights/bias zero-padded to 128 output lanes.
    out_ref[...] = jnp.dot(feat, wfc_ref[...],
                           preferred_element_type=jnp.float32) + bfc_ref[...]


def prepare_conv_head_params(params, hidden=HIDDEN, num_labels=NUM_LABELS):
    """One-time torch-layout -> kernel-layout conversion (hoisted out of the
    per-call hot path)."""
    (w1, b1), (w3, b3), (w5, b5), (wfc, bfc) = params
    H = hidden

    # Block-structured stacked conv weight: rows = [tap j]*[in ch], cols =
    # [c1 out | c3 out | c5 out].  Tap j corresponds to xpad[l + j] with a
    # symmetric zero pad of PAD=2.
    wst = jnp.zeros((TAPS * H, 3 * H), jnp.float32)
    # conv k=1 covers tap j = 2 only.
    wst = wst.at[2 * H:3 * H, 0:H].set(w1[:, :, 0].T)
    # conv k=3 (padding 1) covers taps j = t + 1, t = 0..2.
    for t in range(3):
        j = t + 1
        wst = wst.at[j * H:(j + 1) * H, H:2 * H].set(w3[:, :, t].T)
    # conv k=5 (padding 2) covers taps j = t, t = 0..4.
    for t in range(5):
        wst = wst.at[t * H:(t + 1) * H, 2 * H:3 * H].set(w5[:, :, t].T)

    ball = jnp.concatenate([b1, b3, b5]).reshape(1, 3 * H)

    # FC zero-padded to 128 output lanes (extra columns produce zeros that
    # are sliced off outside the kernel).
    wfc_p = jnp.zeros((3 * H, LANE), jnp.float32).at[:, :num_labels].set(wfc.T)
    bfc_p = jnp.zeros((1, LANE), jnp.float32).at[:, :num_labels].set(
        bfc.reshape(1, num_labels))
    return wst, ball, wfc_p, bfc_p


def conv_head_pallas(features, prepared, num_labels=NUM_LABELS):
    """features: (B, L, H) float32 -> logits (B, num_labels) float32."""
    B, L, H = features.shape
    wst, ball, wfc_p, bfc_p = prepared

    # im2col slab: x_taps[b*L + l, j*H + i] = features[b, l + j - PAD, i]
    # (zero when out of range).  One small XLA fusion; replaces the nine
    # shifted, sublane-unaligned slices previously done inside the kernel.
    xpad = jnp.pad(features, ((0, 0), (PAD, PAD), (0, 0)))
    x_taps = jnp.concatenate([xpad[:, j:j + L, :] for j in range(TAPS)],
                             axis=-1).reshape(B * L, TAPS * H)

    # Single invocation (no grid): every operand is a whole-array VMEM block.
    vmem = pl.BlockSpec(memory_space=pltpu.MemorySpace.VMEM)
    out = pl.pallas_call(
        functools.partial(conv_head_kernel, batch=B, seqlen=L),
        out_shape=jax.ShapeDtypeStruct((B, LANE), jnp.float32),
        in_specs=[vmem, vmem, vmem, vmem, vmem],
        out_specs=vmem,
    )(x_taps, wst, ball, wfc_p, bfc_p)
    return out[:, :num_labels]


# ---------------- deterministic parameter init (torch-like uniform) ----------
def init_params(key, hidden, num_labels):
    ks = jax.random.split(key, 8)

    def conv_init(kw, kb, out_c, in_c, ksz):
        bound = 1.0 / jnp.sqrt(in_c * ksz)
        w = jax.random.uniform(kw, (out_c, in_c, ksz), jnp.float32,
                               -bound, bound)
        b = jax.random.uniform(kb, (out_c,), jnp.float32, -bound, bound)
        return w, b

    def linear_init(kw, kb, out_f, in_f):
        bound = 1.0 / jnp.sqrt(in_f)
        w = jax.random.uniform(kw, (out_f, in_f), jnp.float32, -bound, bound)
        b = jax.random.uniform(kb, (out_f,), jnp.float32, -bound, bound)
        return w, b

    p1 = conv_init(ks[0], ks[1], hidden, hidden, 1)
    p3 = conv_init(ks[2], ks[3], hidden, hidden, 3)
    p5 = conv_init(ks[4], ks[5], hidden, hidden, 5)
    pfc = linear_init(ks[6], ks[7], num_labels, hidden * 3)
    return p1, p3, p5, pfc


# ---------------- pure-JAX reference (mirrors the PyTorch forward) -----------
def conv_head_ref(features, params):
    (w1, b1), (w3, b3), (w5, b5), (wfc, bfc) = params
    x = jnp.transpose(features, (0, 2, 1))        # (B, H, L)  == NCL

    def conv(x, w, b, pad):
        y = lax.conv_general_dilated(
            x, w, window_strides=(1,), padding=[(pad, pad)],
            dimension_numbers=("NCH", "OIH", "NCH"))
        return y + b[None, :, None]

    c1 = conv(x, w1, b1, 0)
    c3 = conv(x, w3, b3, 1)
    c5 = conv(x, w5, b5, 2)
    pool = lambda c: jax.nn.relu(jnp.max(c, axis=-1))        # (B, H)
    feat = jnp.concatenate([pool(c1), pool(c3), pool(c5)], axis=1)  # (B, 3H)
    return feat @ wfc.T + bfc[None, :]                       # (B, num_labels)


if __name__ == "__main__":
    key = jax.random.PRNGKey(0)
    k_feat, k_param = jax.random.split(key)

    features = jax.random.normal(k_feat, (BATCH, SEQ, HIDDEN), jnp.float32)
    params = init_params(k_param, HIDDEN, NUM_LABELS)
    prepared = prepare_conv_head_params(params)       # one-time weight prep

    out = conv_head_pallas(features, prepared)
    out = jax.block_until_ready(out)

    ref = conv_head_ref(features, params)
    assert out.shape == (BATCH, NUM_LABELS)
    assert jnp.allclose(out, ref, atol=1e-4, rtol=1e-4), (out, ref)

    print("KERNEL_OK")
</pallas_src>

<mosaic_0001>
module attributes {stable_mosaic.version = 11 : i64} {
  func.func @conv_head_kernel(%arg0: memref<16x160xf32, #tpu.memory_space<vmem>>, %arg1: memref<160x96xf32, #tpu.memory_space<vmem>>, %arg2: memref<1x96xf32, #tpu.memory_space<vmem>>, %arg3: memref<96x128xf32, #tpu.memory_space<vmem>>, %arg4: memref<1x128xf32, #tpu.memory_space<vmem>>, %arg5: memref<2x128xf32, #tpu.memory_space<vmem>>) attributes {dimension_semantics = [], scalar_prefetch = 0 : i64, scratch_operands = 0 : i64, tpu.core_type = #tpu.core_type<tc>} {
    %c0 = arith.constant 0 : index
    %c0_0 = arith.constant 0 : index
    %0 = vector.load %arg0[%c0, %c0_0] : memref<16x160xf32, #tpu.memory_space<vmem>>, vector<16x160xf32>
    %c0_1 = arith.constant 0 : index
    %c0_2 = arith.constant 0 : index
    %1 = vector.load %arg1[%c0_1, %c0_2] : memref<160x96xf32, #tpu.memory_space<vmem>>, vector<160x96xf32>
    %cst = arith.constant dense<0.000000e+00> : vector<16x96xf32>
    %2 = tpu.matmul %0, %1, %cst {dimension_numbers = #tpu.dot_dimension_numbers<[1], [0], [0], [1], [0, 0, 1, 1], [], []>} : vector<16x160xf32>, vector<160x96xf32>, vector<16x96xf32> -> vector<16x96xf32>
    %3 = vector.extract_strided_slice %2 {offsets = [0, 0], sizes = [8, 96], strides = [1, 1]} : vector<16x96xf32> to vector<8x96xf32>
    %cst_3 = arith.constant dense<0xFF800000> : vector<96xf32>
    %4 = vector.multi_reduction <maximumf>, %3, %cst_3 [0] : vector<8x96xf32> to vector<96xf32>
    %5 = vector.shape_cast %4 : vector<96xf32> to vector<1x96xf32>
    %6 = vector.extract_strided_slice %2 {offsets = [8, 0], sizes = [8, 96], strides = [1, 1]} : vector<16x96xf32> to vector<8x96xf32>
    %cst_4 = arith.constant dense<0xFF800000> : vector<96xf32>
    %7 = vector.multi_reduction <maximumf>, %6, %cst_4 [0] : vector<8x96xf32> to vector<96xf32>
    %8 = vector.shape_cast %7 : vector<96xf32> to vector<1x96xf32>
    %9 = tpu.concatenate %5, %8 in 0 : vector<1x96xf32>, vector<1x96xf32> -> vector<2x96xf32>
    %c0_5 = arith.constant 0 : index
    %c0_6 = arith.constant 0 : index
    %10 = vector.load %arg2[%c0_5, %c0_6] : memref<1x96xf32, #tpu.memory_space<vmem>>, vector<1x96xf32>
    %11 = vector.broadcast %10 : vector<1x96xf32> to vector<2x96xf32>
    %12 = arith.addf %9, %11 : vector<2x96xf32>
    %cst_7 = arith.constant 0.000000e+00 : f32
    %13 = vector.broadcast %cst_7 : f32 to vector<2x96xf32>
    %14 = arith.maximumf %12, %13 : vector<2x96xf32>
    %c0_8 = arith.constant 0 : index
    %c0_9 = arith.constant 0 : index
    %15 = vector.load %arg3[%c0_8, %c0_9] : memref<96x128xf32, #tpu.memory_space<vmem>>, vector<96x128xf32>
    %cst_10 = arith.constant dense<0.000000e+00> : vector<2x128xf32>
    %16 = tpu.matmul %14, %15, %cst_10 {dimension_numbers = #tpu.dot_dimension_numbers<[1], [0], [0], [1], [0, 0, 1, 1], [], []>} : vector<2x96xf32>, vector<96x128xf32>, vector<2x128xf32> -> vector<2x128xf32>
    %c0_11 = arith.constant 0 : index
    %c0_12 = arith.constant 0 : index
    %17 = vector.load %arg4[%c0_11, %c0_12] : memref<1x128xf32, #tpu.memory_space<vmem>>, vector<1x128xf32>
    %18 = vector.broadcast %17 : vector<1x128xf32> to vector<2x128xf32>
    %19 = arith.addf %16, %18 : vector<2x128xf32>
    %c0_13 = arith.constant 0 : index
    %c0_14 = arith.constant 0 : index
    %20 = vector.load %arg5[%c0_13, %c0_14] : memref<2x128xf32, #tpu.memory_space<vmem>>, vector<2x128xf32>
    tpu.vector_store %arg5[%c0_13, %c0_14], %19 {strides = array<i32>} : memref<2x128xf32, #tpu.memory_space<vmem>>, vector<2x128xf32>,
    return
  }
}

</mosaic_0001>

<bundles_post_ra>
// kernel: tpu_custom_call.1
= control target key start
LH: loop header
LB: loop body
LE: loop exit
PB: predicated region body
PF: predicated region fallthrough
CT: control target
= control target key end

     0   :  { %10 = vsyncpa [#allocation3], 0  ;;  %s540_s0 = inlined_call_operand.hbm [shape: f32[16,160], index: 0, kind: input, shape index: {}]   ;;  %s541_s1 = inlined_call_operand.hbm [shape: f32[160,96], index: 1, kind: input, shape index: {}]   ;;  %s542_s2 = inlined_call_operand.vmem [shape: f32[1,96], index: 2, kind: input, shape index: {}]   ;;  %s543_s3 = inlined_call_operand.hbm [shape: f32[96,128], index: 3, kind: input, shape index: {}]   ;;  %s544_s4 = inlined_call_operand.vmem [shape: f32[1,128], index: 4, kind: input, shape index: {}]   ;;  %s545_s5 = inlined_call_operand.hbm [shape: f32[2,128], index: 5, kind: output, shape index: {}]  }
   0x1   :  { %11 = vsyncpa [#allocation6], 0 }
   0x2   :  { %12 = vsyncpa [#allocation4], 0  ;;  %s444_s18 = smov [#allocation5]  }
   0x3   :  { %s30_s19 = sshll.u32 %s444_s18, 4  ;;  %s31_s19 = int_to_ptr.vmem [resolvable:$true] %s30_s19 }
   0x4   :  { %s366_s20 = scalar_lea.vmem %s31_s19, 2560  ;;  %p371_p1 = scmp.lt.s32.totalorder %s31_s19, %s31_s19 }
   0x5   :  { %p367_p0 = scmp.ne.s32.totalorder %s31_s19, %s366_s20  ;;  %p372_p2 = scmp.lt.s32.totalorder %s366_s20, %s366_s20 }
   0x7   :  { %p373_p3 = por %p372_p2, %p371_p1 }
   0x9   :  { %p374_p4 = pnand %p373_p3, %p367_p0 }
   0xb   :  { %377 = shalt.err (!%p374_p4)
}
   0xc   :  { %s445_s21 = smov 128   ;;  %s446_s22 = smov 8  }
   0xd   :  { %36 = dma.hbm_to_vmem [thread:$0]  %s541_s1, 2560, %s31_s19, [#allocation6], %s445_s21, %s445_s21, %s446_s22  }
   0xe   :  { %s447_s25 = smov [#allocation2]  }
   0xf   :  { %s18_s26 = sshll.u32 %s447_s25, 4  ;;  %s19_s26 = int_to_ptr.vmem [resolvable:$true] %s18_s26 }
  0x10   :  { %s386_s27 = scalar_lea.vmem %s19_s26, 512  ;;  %p391_p6 = scmp.lt.s32.totalorder %s19_s26, %s19_s26 }
  0x11   :  { %p387_p5 = scmp.ne.s32.totalorder %s19_s26, %s386_s27  ;;  %p392_p7 = scmp.lt.s32.totalorder %s386_s27, %s386_s27 }
  0x13   :  { %p393_p8 = por %p392_p7, %p391_p6 }
  0x15   :  { %p394_p9 = pnand %p393_p8, %p387_p5 }
  0x17   :  { %397 = shalt.err (!%p394_p9)
}
  0x18   :  { %s448_s28 = smov 256   ;;  %s449_s29 = smov 16  }
  0x19   :  { %24 = dma.hbm_to_vmem [thread:$0]  %s540_s0, 512, %s19_s26, [#allocation3], %s448_s28, %s448_s28, %s449_s29  }
  0x1a   :  { %s450_s7 = smov [#allocation7]  }
  0x1b   :  { %s44_s8 = sshll.u32 %s450_s7, 4  ;;  %s45_s8 = int_to_ptr.vmem [resolvable:$true] %s44_s8 }
  0x1c   :  { %s406_s1 = scalar_lea.vmem %s45_s8, 1536  ;;  %p411_p11 = scmp.lt.s32.totalorder %s45_s8, %s45_s8 }
  0x1d   :  { %p407_p10 = scmp.ne.s32.totalorder %s45_s8, %s406_s1  ;;  %p412_p12 = scmp.lt.s32.totalorder %s406_s1, %s406_s1 }
  0x1f   :  { %p413_p13 = por %p412_p12, %p411_p11 }
  0x21   :  { %p414_p0 = pnand %p413_p13, %p407_p10 }
  0x23   :  { %417 = shalt.err (!%p414_p0)
}
  0x24   :  { %50 = dma.hbm_to_vmem [thread:$0]  %s543_s3, 1536, %s45_s8, [#allocation6], %s445_s21, %s445_s21, %s446_s22  }
  0x25   :  { %438 = dma.done.wait [#allocation3], 512  }
  0x26   :  { %439 = vsyncadd [#allocation3], 4294966784 }
  0x27   :  { %440 = dma.done.wait [#allocation6], 4096  }
  0x28   :  { %441 = vsyncadd [#allocation6], 4294963200  ;;  %v451_v0 = vmov 0.0   ;;  %v81_v1 = vld [vmem:[#allocation5 + $0x78] sm:$0xff]  ;;  %v80_v2 = vld [vmem:[#allocation5 + $0x70] sm:$0xff]  ;;  %vm86_vm0 = vcmask 261120  }
  0x29   :  { %93 = vmatprep.subr.mxu0 %v451_v0  ;;  %321 = vmatprep.subr.mxu1 %v451_v0  ;;  %v79_v3 = vld [vmem:[#allocation5 + $0x68] sm:$0xff]  ;;  %v78_v4 = vld [vmem:[#allocation5 + $0x60] sm:$0xff]  ;;  %v77_v5 = vld [vmem:[#allocation5 + $0x58] sm:$0xff]  ;;  %vm452_vm1 = vmmov 0   ;;  %vm168_vm2 = vcmask 785408   ;;  %vm183_vm3 = vcmask 1040384  }
  0x2a   :  { %94 = vmatpush1.msra.mxu0 %v81_v1  ;;  %v63_v6 = vld [vmem:[#allocation2 + $0x8] sm:$0xff]  ;;  %v76_v7 = vld [vmem:[#allocation5 + $0x50] sm:$0xff]  ;;  %v74_v9 = vld [vmem:[#allocation5 + $0x40] sm:$0xff]  ;;  %345 = vmatprep.mubr.msk.f32.mxu1 %vm452_vm1, %v451_v0  ;;  %s453_s13 = smov [#allocation8]  }
  0x2b   :  { %95 = vmatprep.subr.mxu0 %v451_v0  ;;  %303 = vmatprep.mubr.msk.f32.mxu0 %vm86_vm0, %v63_v6  ;;  %v75_v8 = vld [vmem:[#allocation5 + $0x48] sm:$0xff]  ;;  %v73_v10 = vld [vmem:[#allocation5 + $0x38] sm:$0xff]  ;;  %v72_v11 = vld [vmem:[#allocation5 + $0x30] sm:$0xff]  ;;  %s293_s14 = sshll.u32 %s453_s13, 4  ;;  %s294_s14 = int_to_ptr.vmem [resolvable:$true] %s293_s14 }
  0x2c   :  { %96 = vmatpush1.msra.mxu0 %v80_v2  ;;  %v71_v12 = vld [vmem:[#allocation5 + $0x28] sm:$0xff]  ;;  %v70_v13 = vld [vmem:[#allocation5 + $0x20] sm:$0xff]  ;;  %v69_v14 = vld [vmem:[#allocation5 + $0x18] sm:$0xff]  ;;  %s418_s15 = scalar_lea.vmem %s294_s14, 32  ;;  %p423_p2 = scmp.lt.s32.totalorder %s294_s14, %s294_s14 }
  0x2d   :  { %97 = vmatprep.subr.mxu0 %v451_v0  ;;  %v68_v15 = vld [vmem:[#allocation5 + $0x10] sm:$0xff]  ;;  %v67_v16 = vld [vmem:[#allocation5 + $0x8] sm:$0xff]  ;;  %v66_v17 = vld [vmem:[#allocation5] sm:$0xff]  ;;  %p419_p1 = scmp.ne.s32.totalorder %s294_s14, %s418_s15  ;;  %p424_p3 = scmp.lt.s32.totalorder %s418_s15, %s418_s15 }
  0x2e   :  { %98 = vmatpush1.msra.mxu0 %v79_v3  ;;  %v85_v18 = vld [vmem:[#allocation5 + $0x98] sm:$0xff]  ;;  %v84_v19 = vld [vmem:[#allocation5 + $0x90] sm:$0xff]  ;;  %v83_v20 = vld [vmem:[#allocation5 + $0x88] sm:$0xff] }
  0x2f   :  { %99 = vmatprep.subr.mxu0 %v451_v0  ;;  %v82_v21 = vld [vmem:[#allocation5 + $0x80] sm:$0xff]  ;;  %v65_v23 = vld [vmem:[#allocation2 + $0x18] sm:$0xff]  ;;  %v64_v24 = vld [vmem:[#allocation2 + $0x10] sm:$0xff]  ;;  %p425_p4 = por %p424_p3, %p423_p2 }
  0x30   :  { %100 = vmatpush1.msra.mxu0 %v78_v4  ;;  %v62_v22 = vld [vmem:[#allocation2] sm:$0xff]  ;;  %v205_v25 = vld [vmem:[#allocation7 + $0x58] sm:$0xff]  ;;  %v204_v26 = vld [vmem:[#allocation7 + $0x50] sm:$0xff] }
  0x31   :  { %101 = vmatprep.subr.mxu0 %v451_v0  ;;  %322 = vmatpush3.msra.mxu1 %v205_v25  ;;  %v203_v27 = vld [vmem:[#allocation7 + $0x48] sm:$0xff]  ;;  %v202_v28 = vld [vmem:[#allocation7 + $0x40] sm:$0xff]  ;;  %v201_v29 = vld [vmem:[#allocation7 + $0x38] sm:$0xff]  ;;  %p426_p5 = pnand %p425_p4, %p419_p1 }
  0x32   :  { %102 = vmatpush1.msra.mxu0 %v77_v5  ;;  %323 = vmatprep.subr.mxu1 %v451_v0  ;;  %v200_v30 = vld [vmem:[#allocation7 + $0x30] sm:$0xff]  ;;  %v199_v31 = vld [vmem:[#allocation7 + $0x28] sm:$0xff]  ;;  %v198_v32 = vld [vmem:[#allocation7 + $0x20] sm:$0xff] }
  0x33   :  { %103 = vmatprep.subr.mxu0 %v451_v0  ;;  %324 = vmatpush3.msra.mxu1 %v204_v26  ;;  %v197_v33 = vld [vmem:[#allocation7 + $0x18] sm:$0xff]  ;;  %v196_v34 = vld [vmem:[#allocation7 + $0x10] sm:$0xff]  ;;  %v195_v35 = vld [vmem:[#allocation7 + $0x8] sm:$0xff] }
  0x34   :  { %104 = vmatpush1.msra.mxu0 %v76_v7  ;;  %325 = vmatprep.subr.mxu1 %v451_v0  ;;  %v194_v36 = vld [vmem:[#allocation7] sm:$0xff] }
  0x35   :  { %105 = vmatprep.subr.mxu0 %v451_v0  ;;  %326 = vmatpush3.msra.mxu1 %v203_v27  ;;  %v305_v55 = vld [vmem:[%s542_s2] ss:$0 sm:$0xff] }
  0x36   :  { %106 = vmatpush1.msra.mxu0 %v75_v8  ;;  %327 = vmatprep.subr.mxu1 %v451_v0  ;;  %v306_v59 = vld [vmem:[%s544_s4] ss:$0 sm:$0xff] }
  0x37   :  { %107 = vmatprep.subr.mxu0 %v451_v0  ;;  %328 = vmatpush3.msra.mxu1 %v202_v28 }
  0x38   :  { %108 = vmatpush1.msra.mxu0 %v74_v9  ;;  %329 = vmatprep.subr.mxu1 %v451_v0 }
  0x39   :  { %109 = vmatprep.subr.mxu0 %v451_v0  ;;  %330 = vmatpush3.msra.mxu1 %v201_v29 }
  0x3a   :  { %110 = vmatpush1.msra.mxu0 %v73_v10  ;;  %331 = vmatprep.subr.mxu1 %v451_v0 }
  0x3b   :  { %111 = vmatprep.subr.mxu0 %v451_v0  ;;  %332 = vmatpush3.msra.mxu1 %v200_v30 }
  0x3c   :  { %112 = vmatpush1.msra.mxu0 %v72_v11  ;;  %333 = vmatprep.subr.mxu1 %v451_v0 }
  0x3d   :  { %113 = vmatprep.subr.mxu0 %v451_v0  ;;  %334 = vmatpush3.msra.mxu1 %v199_v31 }
  0x3e   :  { %114 = vmatpush1.msra.mxu0 %v71_v12  ;;  %335 = vmatprep.subr.mxu1 %v451_v0 }
  0x3f   :  { %115 = vmatprep.subr.mxu0 %v451_v0  ;;  %336 = vmatpush3.msra.mxu1 %v198_v32 }
  0x40   :  { %116 = vmatpush1.msra.mxu0 %v70_v13  ;;  %337 = vmatprep.subr.mxu1 %v451_v0 }
  0x41   :  { %117 = vmatprep.subr.mxu0 %v451_v0  ;;  %338 = vmatpush3.msra.mxu1 %v197_v33 }
  0x42   :  { %118 = vmatpush1.msra.mxu0 %v69_v14  ;;  %339 = vmatprep.subr.mxu1 %v451_v0 }
  0x43   :  { %119 = vmatprep.subr.mxu0 %v451_v0  ;;  %340 = vmatpush3.msra.mxu1 %v196_v34 }
  0x44   :  { %120 = vmatpush1.msra.mxu0 %v68_v15  ;;  %341 = vmatprep.subr.mxu1 %v451_v0 }
  0x45   :  { %121 = vmatprep.subr.mxu0 %v451_v0  ;;  %342 = vmatpush3.msra.mxu1 %v195_v35 }
  0x46   :  { %122 = vmatpush1.msra.mxu0 %v67_v16  ;;  %343 = vmatprep.subr.mxu1 %v451_v0 }
  0x47   :  { %123 = vmatprep.subr.mxu0 %v451_v0  ;;  %344 = vmatpush3.msra.mxu1 %v194_v36 }
  0x48   :  { %124 = vmatpush1.msra.mxu0 %v66_v17 }
  0x49   :  { %149 = vmatprep.subr.mxu0 %v451_v0 }
  0x4a   :  { %150 = vmatpush2.msra.mxu0 %v85_v18 }
  0x4b   :  { %151 = vmatprep.subr.mxu0 %v451_v0 }
  0x4c   :  { %152 = vmatpush2.msra.mxu0 %v84_v19 }
  0x4d   :  { %153 = vmatprep.subr.mxu0 %v451_v0 }
  0x4e   :  { %154 = vmatpush2.msra.mxu0 %v83_v20 }
  0x4f   :  { %155 = vmatprep.subr.mxu0 %v451_v0 }
  0x50   :  { %156 = vmatpush2.msra.mxu0 %v82_v21 }
  0x51   :  { %158 = vmatmul.mubr.f32.vlgmr.msra.gmra.mxu0 %v62_v22 }
  0x52   :  { %304 = vmatprep.mubr.msk.f32.mxu0 %vm86_vm0, %v65_v23 }
  0x55   :  { %163 = vmatmul.mubr.f32.gmra.mxu0 %v64_v24 }
 0x111   :  { %v159_v37 = vpop.f32.mrf.mxu0 }
 0x112   :  { %v169_v38 = vsel %vm168_vm2, %v159_v37, -inf }
 0x113   :  { %v170_v39 = vrot.slane %v169_v38, 4  ;;  %v161_v40 = vpop.f32.mrf.mxu0 }
 0x115   :  { %v171_v41 = vmax.f32 %v169_v38, %v170_v39  ;;  %v164_v42 = vpop.f32.mrf.mxu0 }
 0x116   :  { %v176_v43 = vsel %vm168_vm2, %v164_v42, -inf }
 0x117   :  { %v172_v44 = vrot.slane %v171_v41, 2  ;;  %v177_v45 = vrot.slane %v176_v43, 4  ;;  %v166_v46 = vpop.f32.mrf.mxu0 }
 0x119   :  { %v173_v47 = vmax.f32 %v171_v41, %v172_v44  ;;  %v178_v48 = vmax.f32 %v176_v43, %v177_v45 }
 0x11b   :  { %v179_v49 = vrot.slane %v178_v48, 2  ;;  %v174_v50 = vrot.slane %v173_v47, 1 }
 0x11d   :  { %v180_v51 = vmax.f32 %v178_v48, %v179_v49  ;;  %v175_v53 = vmax.f32 %v173_v47, %v174_v50 }
 0x11f   :  { %v181_v52 = vrot.slane %v180_v51, 1 }
 0x121   :  { %v182_v54 = vmax.f32 %v180_v51, %v181_v52 }
 0x123   :  { %v184_v56 = vsel %vm183_vm3, %v175_v53, %v182_v54 }
 0x124   :  { %v192_v57 = vadd.f32 %v305_v55, %v184_v56 }
 0x126   :  { %v193_v58 = vmax.f32 %v192_v57, 0.0 }
 0x128   :  { %346 = vmatmul.mubr.msk.f32.vlgmr.msra.gmra.mxu1 %vm168_vm2, %v193_v58 }
 0x1e8   :  { %v282_v60 = vpop.f32.mrf.mxu1 }
 0x1e9   :  { %v283_v61 = vadd.f32 %v306_v59, %v282_v60 }
 0x1ea   :  { %v347_v62 = vpop.f32.mrf.mxu1 }
 0x1eb   :  { %286 = vst [vmem:[#allocation8] sm:$0x3] %v283_v61 }
 0x1ec   :  { %429 = shalt.err (!%p426_p5)
}
 0x1ed   :  { %296 = dma.vmem_to_hbm [thread:$0]  %s294_s14, 32, %s545_s5, [#allocation4]  }
 0x1ee   :  { %442 = dma.done.wait [#allocation4], 32  }
 0x1ef   :  { %443 = vsyncadd [#allocation4], 4294967264 }
 0x1f0   :  { %300 = vsyncpa [#allocation3], 1 }
 0x1f1   :  { %301 = vsyncpa [#allocation6], 1 }
 0x1f2   :  { %302 = vsyncpa [#allocation4], 1 }

</bundles_post_ra>
